<compile_context>
chip_gen: v5e
topology: v5e:2x2
jax: 0.10.0
libtpu: 0.0.40
codegen_flags: <defaults>
</compile_context>

<pallas_src>
import functools

import jax
import jax.numpy as jnp
from jax.experimental import pallas as pl
from jax.experimental.pallas import tpu as pltpu


_MAX_DMA_CHUNKS = 8            # max concurrent DMA descriptors for large copies
_MIN_CHUNK_BYTES = 1 << 20     # don't bother splitting below ~1 MiB per chunk


def _dma_copy_kernel(x_hbm, o_hbm, sems, *, chunks):
    # Issue one HBM->HBM DMA per (static) leading-dim chunk, then wait on all
    # of them.  No VMEM staging, no per-grid-step pipeline overhead.
    copies = []
    for c, (start, size) in enumerate(chunks):
        cp = pltpu.make_async_copy(
            x_hbm.at[pl.ds(start, size)],
            o_hbm.at[pl.ds(start, size)],
            sems.at[c],
        )
        cp.start()
        copies.append(cp)
    for cp in copies:
        cp.wait()


def _pallas_copy(x):
    """Materialize a copy of `x` via a direct HBM->HBM DMA Pallas kernel."""
    orig_shape = x.shape
    if x.size == 0:
        return x
    # Give 0-d arrays a leading axis so we can always slice along dim 0.
    work = x.reshape((1,)) if x.ndim == 0 else x
    lead = work.shape[0]
    nbytes = work.size * jnp.dtype(work.dtype).itemsize

    # Up to _MAX_DMA_CHUNKS concurrent DMAs along the leading dim; keep each
    # chunk >= ~1 MiB so small tensors use a single descriptor.
    # TODO(synk): if lead == 1 but the array is huge, chunking an inner dim
    # (or a flattened view) would expose more DMA-queue parallelism.
    n_chunks = max(1, min(_MAX_DMA_CHUNKS, lead, nbytes // _MIN_CHUNK_BYTES))
    base = lead // n_chunks
    chunks = []
    start = 0
    for c in range(n_chunks):
        size = base + (lead - base * n_chunks if c == n_chunks - 1 else 0)
        chunks.append((start, size))
        start += size
    chunks = tuple(chunks)

    out = pl.pallas_call(
        functools.partial(_dma_copy_kernel, chunks=chunks),
        out_shape=jax.ShapeDtypeStruct(work.shape, work.dtype),
        in_specs=[pl.BlockSpec(memory_space=pl.ANY)],
        out_specs=pl.BlockSpec(memory_space=pl.ANY),
        scratch_shapes=[pltpu.SemaphoreType.DMA((n_chunks,))],
    )(work)
    return out.reshape(orig_shape)


class SelectItem:
    """JAX/Pallas equivalent of the PyTorch SelectItem module.

    By default this is zero-copy: selecting the i-th element of a tuple is pure
    Python glue, so no kernel is launched (fastest on all generations).  Pass
    materialize=True to force an explicit copy through the HBM->HBM DMA kernel.
    """

    def __init__(self, item_index, materialize=False):
        self._name = "selectitem"
        self.item_index = item_index
        self.materialize = materialize

    def __call__(self, inputs):
        selected = inputs[self.item_index]
        if not self.materialize:
            # Zero work: identical semantics to `return inputs[item_index]`.
            return selected
        return _pallas_copy(selected)


if __name__ == "__main__":
    key = jax.random.PRNGKey(0)
    k0, k1, k2, k3, k4 = jax.random.split(key, 5)

    batch, seq, hidden = 2, 8, 32
    # Mimic an LSTM-style tuple: (output, (h_n, c_n)); SelectItem(0) picks output.
    output = jax.random.normal(k0, (batch, seq, hidden), dtype=jnp.float32)
    h_n = jax.random.normal(k1, (1, batch, hidden), dtype=jnp.float32)
    c_n = jax.random.normal(k2, (1, batch, hidden), dtype=jnp.float32)
    inputs = (output, (h_n, c_n))

    # Default (recommended) path: zero-copy static selection.
    select = SelectItem(0)
    y0 = jax.block_until_ready(select(inputs))
    assert y0.shape == output.shape and y0.dtype == output.dtype
    assert bool(jnp.all(y0 == output))

    # Explicit materializing path: single-descriptor HBM->HBM DMA.
    select_mat = SelectItem(0, materialize=True)
    y1 = jax.block_until_ready(select_mat(inputs))
    assert y1.shape == output.shape and y1.dtype == output.dtype
    assert bool(jnp.all(y1 == output))

    # Ragged shape (last dim not a multiple of 128): DMA path handles it
    # directly, no VMEM staging / padding needed.
    ragged = jax.random.normal(k3, (4, 5, 127), dtype=jnp.float32)
    y2 = jax.block_until_ready(SelectItem(1, materialize=True)((h_n, ragged)))
    assert y2.shape == ragged.shape and bool(jnp.all(y2 == ragged))

    # Medium tensor (~4 MiB): exercises the multi-chunk concurrent-DMA path.
    big = jax.random.normal(k4, (16, 128, 512), dtype=jnp.float32)
    y3 = jax.block_until_ready(SelectItem(0, materialize=True)((big, h_n)))
    assert y3.shape == big.shape and bool(jnp.all(y3 == big))

    print("KERNEL_OK")
</pallas_src>

<mosaic_0001>
module attributes {stable_mosaic.version = 11 : i64} {
  func.func @_dma_copy_kernel(%arg0: memref<2x8x32xf32, #tpu.memory_space<any>>, %arg1: memref<2x8x32xf32, #tpu.memory_space<any>>, %arg2: memref<1x!tpu.dma_semaphore, #tpu.memory_space<semaphore_mem>>) attributes {dimension_semantics = [], scalar_prefetch = 0 : i64, scratch_operands = 1 : i64, tpu.core_type = #tpu.core_type<tc>} {
    %c0_i32 = arith.constant 0 : i32
    %c0_i32_0 = arith.constant 0 : i32
    %c0_i32_1 = arith.constant 0 : i32
    %c0_i32_2 = arith.constant 0 : i32
    %0 = tpu.memref_slice %arg0[%c0_i32_0, %c0_i32_1, %c0_i32_2] : memref<2x8x32xf32, #tpu.memory_space<any>> -> memref<2x8x32xf32, #tpu.memory_space<any>>
    %c0_i32_3 = arith.constant 0 : i32
    %c0_i32_4 = arith.constant 0 : i32
    %c0_i32_5 = arith.constant 0 : i32
    %1 = tpu.memref_slice %arg1[%c0_i32_3, %c0_i32_4, %c0_i32_5] : memref<2x8x32xf32, #tpu.memory_space<any>> -> memref<2x8x32xf32, #tpu.memory_space<any>>
    %2 = tpu.memref_slice %arg2[%c0_i32] : memref<1x!tpu.dma_semaphore, #tpu.memory_space<semaphore_mem>> -> memref<1x!tpu.dma_semaphore, #tpu.memory_space<semaphore_mem>>
    %3 = tpu.memref_squeeze %2 : memref<1x!tpu.dma_semaphore, #tpu.memory_space<semaphore_mem>> -> memref<!tpu.dma_semaphore, #tpu.memory_space<semaphore_mem>>
    tpu.enqueue_dma source(%0 : memref<2x8x32xf32, #tpu.memory_space<any>>) target(%1 : memref<2x8x32xf32, #tpu.memory_space<any>>) target_semaphore(%3 : memref<!tpu.dma_semaphore, #tpu.memory_space<semaphore_mem>>)
    %c0_i32_6 = arith.constant 0 : i32
    %c0_i32_7 = arith.constant 0 : i32
    %c0_i32_8 = arith.constant 0 : i32
    %c0_i32_9 = arith.constant 0 : i32
    %4 = tpu.memref_slice %arg0[%c0_i32_7, %c0_i32_8, %c0_i32_9] : memref<2x8x32xf32, #tpu.memory_space<any>> -> memref<2x8x32xf32, #tpu.memory_space<any>>
    %c0_i32_10 = arith.constant 0 : i32
    %c0_i32_11 = arith.constant 0 : i32
    %c0_i32_12 = arith.constant 0 : i32
    %5 = tpu.memref_slice %arg1[%c0_i32_10, %c0_i32_11, %c0_i32_12] : memref<2x8x32xf32, #tpu.memory_space<any>> -> memref<2x8x32xf32, #tpu.memory_space<any>>
    %6 = tpu.memref_slice %arg2[%c0_i32_6] : memref<1x!tpu.dma_semaphore, #tpu.memory_space<semaphore_mem>> -> memref<1x!tpu.dma_semaphore, #tpu.memory_space<semaphore_mem>>
    %7 = tpu.memref_squeeze %6 : memref<1x!tpu.dma_semaphore, #tpu.memory_space<semaphore_mem>> -> memref<!tpu.dma_semaphore, #tpu.memory_space<semaphore_mem>>
    tpu.wait_dma2 semaphore(%7 : memref<!tpu.dma_semaphore, #tpu.memory_space<semaphore_mem>>) src(%4 : memref<2x8x32xf32, #tpu.memory_space<any>>) dst(%5 : memref<2x8x32xf32, #tpu.memory_space<any>>)
    return
  }
}

</mosaic_0001>

<bundles_post_ra>
// kernel: tpu_custom_call.1
= control target key start
LH: loop header
LB: loop body
LE: loop exit
PB: predicated region body
PF: predicated region fallthrough
CT: control target
= control target key end

     0   :  { %s33_s12 = smov [#allocation2]   ;;  %s34_s13 = smov [#allocation3]   ;;  %s52_s0 = inlined_call_operand.hbm [shape: f32[2,8,32], index: 0, kind: input, shape index: {}]   ;;  %s53_s1 = inlined_call_operand.hbm [shape: f32[2,8,32], index: 1, kind: output, shape index: {}]  }
   0x1   :  { %s10_s8 = sshll.u32 %s52_s0, 4  ;;  %s12_s11 = sshll.u32 %s53_s1, 4  ;;  %s11_s8 = int_to_ptr.hbm [resolvable:$true] %s10_s8  ;;  %s13_s11 = int_to_ptr.hbm [resolvable:$true] %s12_s11 }
   0x2   :  { %s35_s14 = smov 0  }
   0x3   :  { %16 = dma.general %s11_s8, 256, %s13_s11, %s33_s12, %s34_s13, [#allocation4], %s35_s14, 0  }
   0x4   :  { %31 = dma.done.wait [#allocation2], 256 }
   0x5   :  { %32 = vsyncadd [#allocation2], 4294967040 }
   0x6   :  { %21 = vsyncmov [#allocation2] }
   0x9   :  { %s22_s15 = vpop.sfrf %21 }
   0xa   :  { %p27_p0 = scmp.ne.s32.totalorder %s22_s15, 0 }
   0xc   :  { %26 = shalt.err (%p27_p0)  }

</bundles_post_ra>
